<compile_context>
chip_gen: v6e
topology: v6e:2x2x1
jax: 0.10.0
libtpu: 0.0.40
codegen_flags: <defaults>
</compile_context>

<pallas_src>
import jax
import jax.numpy as jnp
from jax import lax
from jax.experimental import pallas as pl
from jax.experimental.pallas import tpu as pltpu


def basic_conv2d(x_nchw, weight_oihw, gamma, beta, running_mean, running_var,
                 *, stride, padding, eps=1e-3):
    N, Cin, H, W = x_nchw.shape
    Cout, _, KH, KW = weight_oihw.shape
    HO = (H + 2 * padding - KH) // stride + 1
    WO = (W + 2 * padding - KW) // stride + 1
    Hp, Wp = H + 2 * padding, W + 2 * padding
    H1, W1 = Hp - KH + 1, Wp - KW + 1      # stride-1 output extents
    L = H1 * Wp                            # flat accumulator width (row stride = Wp)
    Lin = Hp * Wp + (KW - 1)               # flat input width (tail pad keeps every
                                           # tap slice [off, off+L) in bounds)

    # ---- boundary glue (tiny, XLA-fused ops only) ---------------------------
    # Eval-mode BatchNorm folded: scale into the weights (f32, before the bf16
    # cast), bias applied post-matmul in f32.
    inv = (gamma / jnp.sqrt(running_var + eps)).astype(jnp.float32)
    bias = (beta - running_mean * inv).astype(jnp.float32).reshape(Cout, 1)
    w_fold = weight_oihw.astype(jnp.float32) * inv[:, None, None, None]
    # Per-tap weight slabs: w_taps[i*KW + j] == scaled weight[:, :, i, j].
    w_taps = (jnp.transpose(w_fold, (2, 3, 0, 1))
              .reshape(KH * KW, Cout, Cin).astype(jnp.bfloat16))
    # Zero-pad spatially, flatten (Hp, Wp) so the lane dim is spatial (not Cin),
    # tail-pad KW-1 zeros so the last tap's slice stays in bounds.
    x_pad = jnp.pad(x_nchw, ((0, 0), (0, 0),
                             (padding, padding), (padding, padding)))
    x_flat = x_pad.reshape(N, Cin, Hp * Wp)
    x_flat = jnp.pad(x_flat, ((0, 0), (0, 0), (0, KW - 1))).astype(jnp.bfloat16)

    def kernel(x_ref, w_ref, b_ref, o_ref):
        xv = x_ref[0]                                  # (Cin, Lin) bf16
        acc = None
        for i in range(KH):
            for j in range(KW):
                t = i * KW + j
                off = i * Wp + j
                rhs = xv[:, off:off + L]               # (Cin, L) contiguous lanes
                y = lax.dot_general(w_ref[t], rhs,
                                    (((1,), (0,)), ((), ())),
                                    preferred_element_type=jnp.float32)
                acc = y if acc is None else acc + y    # f32 vreg accumulator
        y = acc + b_ref[...]                           # folded-BN bias (f32)
        o_ref[0] = jnp.maximum(y, 0.0).astype(o_ref.dtype)   # lane-dense store

    flops = 2 * N * KH * KW * Cin * Cout * L
    bytes_accessed = (x_flat.size * 2 + w_taps.size * 2 + bias.size * 4
                      + N * Cout * L * 4)

    out = pl.pallas_call(
        kernel,
        out_shape=jax.ShapeDtypeStruct((N, Cout, L), jnp.float32),
        grid=(N,),
        in_specs=[
            pl.BlockSpec((1, Cin, Lin), lambda n: (n, 0, 0)),        # activations
            pl.BlockSpec((KH * KW, Cout, Cin), lambda n: (0, 0, 0)), # weight taps
            pl.BlockSpec((Cout, 1), lambda n: (0, 0)),               # BN bias
        ],
        out_specs=pl.BlockSpec((1, Cout, L), lambda n: (n, 0, 0)),
        compiler_params=pltpu.CompilerParams(
            dimension_semantics=("parallel",),
            # All blocks (double-buffered) are well under 1 MiB at these sizes.
            vmem_limit_bytes=8 * 1024 * 1024),
        cost_estimate=pl.CostEstimate(flops=flops, transcendentals=0,
                                      bytes_accessed=bytes_accessed),
    )(x_flat, w_taps, bias)

    # Free contiguous reshape; crop the Wp-W1 junk columns and decimate by
    # stride in the wrapper (tiny XLA slice).
    y = out.reshape(N, Cout, H1, Wp)[:, :, ::stride, :W1:stride]
    return y


def _reference(x_nchw, weight_oihw, gamma, beta, running_mean, running_var,
               *, stride, padding, eps=1e-3):
    y = lax.conv_general_dilated(
        x_nchw.astype(jnp.float32), weight_oihw.astype(jnp.float32),
        window_strides=(stride, stride),
        padding=((padding, padding), (padding, padding)),
        dimension_numbers=("NCHW", "OIHW", "NCHW"),
        precision=lax.Precision.HIGHEST)
    inv = gamma / jnp.sqrt(running_var + eps)
    y = y * inv[None, :, None, None] + (beta - running_mean * inv)[None, :, None, None]
    return jnp.maximum(y, 0.0)


if __name__ == "__main__":
    # BasicConv2d(in_planes=4, out_planes=8, kernel_size=3, stride=1, padding=1)
    N, Cin, H, W = 2, 4, 16, 16
    Cout, Ksz, stride, padding = 8, 3, 1, 1
    eps = 1e-3

    key = jax.random.PRNGKey(0)
    kx, kw = jax.random.split(key)
    x = jax.random.normal(kx, (N, Cin, H, W), dtype=jnp.float32)
    weight = 0.1 * jax.random.normal(kw, (Cout, Cin, Ksz, Ksz), dtype=jnp.float32)

    gamma = 1.0 + 0.1 * jnp.arange(Cout, dtype=jnp.float32)
    beta = 0.01 * jnp.arange(Cout, dtype=jnp.float32)
    running_mean = 0.05 * jnp.arange(Cout, dtype=jnp.float32)
    running_var = 1.0 + 0.02 * jnp.arange(Cout, dtype=jnp.float32)

    out = basic_conv2d(x, weight, gamma, beta, running_mean, running_var,
                       stride=stride, padding=padding, eps=eps)
    out = jax.block_until_ready(out)
    assert out.shape == (N, Cout, H, W), out.shape

    # Tight check: reference built from exactly the kernel's quantized operands
    # (bf16 activations, BN-scale-folded bf16 weights, f32 bias) -- must match
    # up to f32 accumulation-order noise.
    inv = gamma / jnp.sqrt(running_var + eps)
    bias = beta - running_mean * inv
    xq = x.astype(jnp.bfloat16).astype(jnp.float32)
    wq = (weight * inv[:, None, None, None]).astype(jnp.bfloat16).astype(jnp.float32)
    yq = lax.conv_general_dilated(
        xq, wq, window_strides=(stride, stride),
        padding=((padding, padding), (padding, padding)),
        dimension_numbers=("NCHW", "OIHW", "NCHW"),
        precision=lax.Precision.HIGHEST)
    ref_q = jnp.maximum(yq + bias[None, :, None, None], 0.0)
    assert jnp.allclose(out, ref_q, atol=1e-4, rtol=1e-4), \
        "mismatch vs bf16-quantized reference"

    # Loose end-to-end check against the pure-f32 reference (bf16 MXU inputs).
    ref = _reference(x, weight, gamma, beta, running_mean, running_var,
                     stride=stride, padding=padding, eps=eps)
    assert jnp.allclose(out, ref, atol=5e-2, rtol=5e-2), \
        "mismatch vs f32 reference"

    print("KERNEL_OK")
</pallas_src>

<mosaic_0001>
module attributes {stable_mosaic.version = 11 : i64} {
  func.func @kernel(%arg0: i32, %arg1: memref<1x4x326xbf16, #tpu.memory_space<vmem>>, %arg2: memref<9x8x4xbf16, #tpu.memory_space<vmem>>, %arg3: memref<8x1xf32, #tpu.memory_space<vmem>>, %arg4: memref<1x8x288xf32, #tpu.memory_space<vmem>>) attributes {dimension_semantics = [#tpu.dimension_semantics<parallel>], iteration_bounds = array<i64: 2>, scalar_prefetch = 0 : i64, scratch_operands = 0 : i64, tpu.core_type = #tpu.core_type<tc>, window_params = [{transform_indices = @transform_0, window_bounds = array<i64: 1, 4, 326>}, {pipeline_mode = #tpu.pipeline_mode<synchronous>, transform_indices = @transform_1, window_bounds = array<i64: 9, 8, 4>}, {pipeline_mode = #tpu.pipeline_mode<synchronous>, transform_indices = @transform_2, window_bounds = array<i64: 8, 1>}, {transform_indices = @transform_3, window_bounds = array<i64: 1, 8, 288>}]} {
    %c0 = arith.constant 0 : index
    %c0_0 = arith.constant 0 : index
    %c0_1 = arith.constant 0 : index
    %0 = vector.load %arg1[%c0, %c0_0, %c0_1] : memref<1x4x326xbf16, #tpu.memory_space<vmem>>, vector<1x4x326xbf16>
    %1 = vector.shape_cast %0 : vector<1x4x326xbf16> to vector<4x326xbf16>
    %2 = vector.extract_strided_slice %1 {offsets = [0, 0], sizes = [4, 288], strides = [1, 1]} : vector<4x326xbf16> to vector<4x288xbf16>
    %c0_2 = arith.constant 0 : index
    %c0_3 = arith.constant 0 : index
    %c0_4 = arith.constant 0 : index
    %3 = vector.load %arg2[%c0_2, %c0_3, %c0_4] : memref<9x8x4xbf16, #tpu.memory_space<vmem>>, vector<1x8x4xbf16>
    %4 = vector.shape_cast %3 : vector<1x8x4xbf16> to vector<8x4xbf16>
    %cst = arith.constant dense<0.000000e+00> : vector<8x288xf32>
    %5 = tpu.matmul %4, %2, %cst {dimension_numbers = #tpu.dot_dimension_numbers<[1], [0], [0], [1], [0, 0, 1, 1], [], []>} : vector<8x4xbf16>, vector<4x288xbf16>, vector<8x288xf32> -> vector<8x288xf32>
    %6 = vector.extract_strided_slice %1 {offsets = [0, 1], sizes = [4, 288], strides = [1, 1]} : vector<4x326xbf16> to vector<4x288xbf16>
    %c1 = arith.constant 1 : index
    %c0_5 = arith.constant 0 : index
    %c0_6 = arith.constant 0 : index
    %7 = vector.load %arg2[%c1, %c0_5, %c0_6] : memref<9x8x4xbf16, #tpu.memory_space<vmem>>, vector<1x8x4xbf16>
    %8 = vector.shape_cast %7 : vector<1x8x4xbf16> to vector<8x4xbf16>
    %cst_7 = arith.constant dense<0.000000e+00> : vector<8x288xf32>
    %9 = tpu.matmul %8, %6, %cst_7 {dimension_numbers = #tpu.dot_dimension_numbers<[1], [0], [0], [1], [0, 0, 1, 1], [], []>} : vector<8x4xbf16>, vector<4x288xbf16>, vector<8x288xf32> -> vector<8x288xf32>
    %10 = arith.addf %5, %9 : vector<8x288xf32>
    %11 = vector.extract_strided_slice %1 {offsets = [0, 2], sizes = [4, 288], strides = [1, 1]} : vector<4x326xbf16> to vector<4x288xbf16>
    %c2 = arith.constant 2 : index
    %c0_8 = arith.constant 0 : index
    %c0_9 = arith.constant 0 : index
    %12 = vector.load %arg2[%c2, %c0_8, %c0_9] : memref<9x8x4xbf16, #tpu.memory_space<vmem>>, vector<1x8x4xbf16>
    %13 = vector.shape_cast %12 : vector<1x8x4xbf16> to vector<8x4xbf16>
    %cst_10 = arith.constant dense<0.000000e+00> : vector<8x288xf32>
    %14 = tpu.matmul %13, %11, %cst_10 {dimension_numbers = #tpu.dot_dimension_numbers<[1], [0], [0], [1], [0, 0, 1, 1], [], []>} : vector<8x4xbf16>, vector<4x288xbf16>, vector<8x288xf32> -> vector<8x288xf32>
    %15 = arith.addf %10, %14 : vector<8x288xf32>
    %16 = vector.extract_strided_slice %1 {offsets = [0, 18], sizes = [4, 288], strides = [1, 1]} : vector<4x326xbf16> to vector<4x288xbf16>
    %c3 = arith.constant 3 : index
    %c0_11 = arith.constant 0 : index
    %c0_12 = arith.constant 0 : index
    %17 = vector.load %arg2[%c3, %c0_11, %c0_12] : memref<9x8x4xbf16, #tpu.memory_space<vmem>>, vector<1x8x4xbf16>
    %18 = vector.shape_cast %17 : vector<1x8x4xbf16> to vector<8x4xbf16>
    %cst_13 = arith.constant dense<0.000000e+00> : vector<8x288xf32>
    %19 = tpu.matmul %18, %16, %cst_13 {dimension_numbers = #tpu.dot_dimension_numbers<[1], [0], [0], [1], [0, 0, 1, 1], [], []>} : vector<8x4xbf16>, vector<4x288xbf16>, vector<8x288xf32> -> vector<8x288xf32>
    %20 = arith.addf %15, %19 : vector<8x288xf32>
    %21 = vector.extract_strided_slice %1 {offsets = [0, 19], sizes = [4, 288], strides = [1, 1]} : vector<4x326xbf16> to vector<4x288xbf16>
    %c4 = arith.constant 4 : index
    %c0_14 = arith.constant 0 : index
    %c0_15 = arith.constant 0 : index
    %22 = vector.load %arg2[%c4, %c0_14, %c0_15] : memref<9x8x4xbf16, #tpu.memory_space<vmem>>, vector<1x8x4xbf16>
    %23 = vector.shape_cast %22 : vector<1x8x4xbf16> to vector<8x4xbf16>
    %cst_16 = arith.constant dense<0.000000e+00> : vector<8x288xf32>
    %24 = tpu.matmul %23, %21, %cst_16 {dimension_numbers = #tpu.dot_dimension_numbers<[1], [0], [0], [1], [0, 0, 1, 1], [], []>} : vector<8x4xbf16>, vector<4x288xbf16>, vector<8x288xf32> -> vector<8x288xf32>
    %25 = arith.addf %20, %24 : vector<8x288xf32>
    %26 = vector.extract_strided_slice %1 {offsets = [0, 20], sizes = [4, 288], strides = [1, 1]} : vector<4x326xbf16> to vector<4x288xbf16>
    %c5 = arith.constant 5 : index
    %c0_17 = arith.constant 0 : index
    %c0_18 = arith.constant 0 : index
    %27 = vector.load %arg2[%c5, %c0_17, %c0_18] : memref<9x8x4xbf16, #tpu.memory_space<vmem>>, vector<1x8x4xbf16>
    %28 = vector.shape_cast %27 : vector<1x8x4xbf16> to vector<8x4xbf16>
    %cst_19 = arith.constant dense<0.000000e+00> : vector<8x288xf32>
    %29 = tpu.matmul %28, %26, %cst_19 {dimension_numbers = #tpu.dot_dimension_numbers<[1], [0], [0], [1], [0, 0, 1, 1], [], []>} : vector<8x4xbf16>, vector<4x288xbf16>, vector<8x288xf32> -> vector<8x288xf32>
    %30 = arith.addf %25, %29 : vector<8x288xf32>
    %31 = vector.extract_strided_slice %1 {offsets = [0, 36], sizes = [4, 288], strides = [1, 1]} : vector<4x326xbf16> to vector<4x288xbf16>
    %c6 = arith.constant 6 : index
    %c0_20 = arith.constant 0 : index
    %c0_21 = arith.constant 0 : index
    %32 = vector.load %arg2[%c6, %c0_20, %c0_21] : memref<9x8x4xbf16, #tpu.memory_space<vmem>>, vector<1x8x4xbf16>
    %33 = vector.shape_cast %32 : vector<1x8x4xbf16> to vector<8x4xbf16>
    %cst_22 = arith.constant dense<0.000000e+00> : vector<8x288xf32>
    %34 = tpu.matmul %33, %31, %cst_22 {dimension_numbers = #tpu.dot_dimension_numbers<[1], [0], [0], [1], [0, 0, 1, 1], [], []>} : vector<8x4xbf16>, vector<4x288xbf16>, vector<8x288xf32> -> vector<8x288xf32>
    %35 = arith.addf %30, %34 : vector<8x288xf32>
    %36 = vector.extract_strided_slice %1 {offsets = [0, 37], sizes = [4, 288], strides = [1, 1]} : vector<4x326xbf16> to vector<4x288xbf16>
    %c7 = arith.constant 7 : index
    %c0_23 = arith.constant 0 : index
    %c0_24 = arith.constant 0 : index
    %37 = vector.load %arg2[%c7, %c0_23, %c0_24] : memref<9x8x4xbf16, #tpu.memory_space<vmem>>, vector<1x8x4xbf16>
    %38 = vector.shape_cast %37 : vector<1x8x4xbf16> to vector<8x4xbf16>
    %cst_25 = arith.constant dense<0.000000e+00> : vector<8x288xf32>
    %39 = tpu.matmul %38, %36, %cst_25 {dimension_numbers = #tpu.dot_dimension_numbers<[1], [0], [0], [1], [0, 0, 1, 1], [], []>} : vector<8x4xbf16>, vector<4x288xbf16>, vector<8x288xf32> -> vector<8x288xf32>
    %40 = arith.addf %35, %39 : vector<8x288xf32>
    %41 = vector.extract_strided_slice %1 {offsets = [0, 38], sizes = [4, 288], strides = [1, 1]} : vector<4x326xbf16> to vector<4x288xbf16>
    %c8 = arith.constant 8 : index
    %c0_26 = arith.constant 0 : index
    %c0_27 = arith.constant 0 : index
    %42 = vector.load %arg2[%c8, %c0_26, %c0_27] : memref<9x8x4xbf16, #tpu.memory_space<vmem>>, vector<1x8x4xbf16>
    %43 = vector.shape_cast %42 : vector<1x8x4xbf16> to vector<8x4xbf16>
    %cst_28 = arith.constant dense<0.000000e+00> : vector<8x288xf32>
    %44 = tpu.matmul %43, %41, %cst_28 {dimension_numbers = #tpu.dot_dimension_numbers<[1], [0], [0], [1], [0, 0, 1, 1], [], []>} : vector<8x4xbf16>, vector<4x288xbf16>, vector<8x288xf32> -> vector<8x288xf32>
    %45 = arith.addf %40, %44 : vector<8x288xf32>
    %c0_29 = arith.constant 0 : index
    %c0_30 = arith.constant 0 : index
    %46 = vector.load %arg3[%c0_29, %c0_30] : memref<8x1xf32, #tpu.memory_space<vmem>>, vector<8x1xf32>
    %47 = vector.broadcast %46 : vector<8x1xf32> to vector<8x288xf32>
    %48 = arith.addf %45, %47 : vector<8x288xf32>
    %cst_31 = arith.constant 0.000000e+00 : f32
    %49 = vector.broadcast %cst_31 : f32 to vector<8x288xf32>
    %50 = arith.maximumf %48, %49 : vector<8x288xf32>
    %c0_32 = arith.constant 0 : index
    %c0_33 = arith.constant 0 : index
    %c0_34 = arith.constant 0 : index
    %51 = vector.load %arg4[%c0_32, %c0_33, %c0_34] : memref<1x8x288xf32, #tpu.memory_space<vmem>>, vector<1x8x288xf32>
    %52 = vector.shape_cast %51 : vector<1x8x288xf32> to vector<8x288xf32>
    %53 = vector.shape_cast %50 : vector<8x288xf32> to vector<1x8x288xf32>
    tpu.vector_store %arg4[%c0_32, %c0_33, %c0_34], %53 {strides = array<i32>} : memref<1x8x288xf32, #tpu.memory_space<vmem>>, vector<1x8x288xf32>,
    return
  }
  func.func @transform_0(%arg0: i32) -> (i32, i32, i32) {
    %c0_i32 = arith.constant 0 : i32
    %c0_i32_0 = arith.constant 0 : i32
    %c0_i32_1 = arith.constant 0 : i32
    return %arg0, %c0_i32, %c0_i32_0 : i32, i32, i32
  }
  func.func @transform_1(%arg0: i32) -> (i32, i32, i32) {
    %c0_i32 = arith.constant 0 : i32
    %c0_i32_0 = arith.constant 0 : i32
    %c0_i32_1 = arith.constant 0 : i32
    %c0_i32_2 = arith.constant 0 : i32
    return %c0_i32, %c0_i32_0, %c0_i32_1 : i32, i32, i32
  }
  func.func @transform_2(%arg0: i32) -> (i32, i32) {
    %c0_i32 = arith.constant 0 : i32
    %c0_i32_0 = arith.constant 0 : i32
    %c0_i32_1 = arith.constant 0 : i32
    return %c0_i32, %c0_i32_0 : i32, i32
  }
  func.func @transform_3(%arg0: i32) -> (i32, i32, i32) {
    %c0_i32 = arith.constant 0 : i32
    %c0_i32_0 = arith.constant 0 : i32
    %c0_i32_1 = arith.constant 0 : i32
    return %arg0, %c0_i32, %c0_i32_0 : i32, i32, i32
  }
}

</mosaic_0001>

<bundles_post_ra>
// kernel: tpu_custom_call.1
= control target key start
LH: loop header
LB: loop body
LE: loop exit
PB: predicated region body
PF: predicated region fallthrough
CT: control target
= control target key end

     0   :  { %8 = vsyncpa [#allocation3], 0  ;;  %s1698_s0 = inlined_call_operand.vmem [shape: bf16[2,4,326], index: 0, kind: input, shape index: {}]   ;;  %s1699_s1 = inlined_call_operand.vmem [shape: bf16[9,8,4], index: 1, kind: input, shape index: {}]   ;;  %s1700_s2 = inlined_call_operand.vmem [shape: f32[8,1], index: 2, kind: input, shape index: {}]   ;;  %s1701_s3 = inlined_call_operand.hbm [shape: f32[2,8,288], index: 3, kind: output, shape index: {}]  }
   0x1   :  { %10 = vsyncpa [#allocation3 + $0x1], 0  ;;  %s1493_s12 = smov 0   ;;  %s1495_s13 = smov 0  }
   0x2   :  { %s1497_s14 = smov 0   ;;  %s1499_s15 = smov 0  }
   0x3 LB: > { %s1514_s16 = sadd.s32 4294967295, %s1458_s15   ;;  %s1227_s17 = sadd.s32 4294967294, %s1458_s15   ;;  %s1458_s15 = sphi %s1499_s15, %s1707_s15   ;;  %s1454_s14 = sphi %s1497_s14, %s1706_s14   ;;  %s1450_s13 = sphi %s1495_s13, %s1705_s13   ;;  %s1446_s12 = sphi %s1493_s12, %s1704_s12  }
   0x4   : > { %s1518_s18 = sadd.s32 1, %s1458_s15   ;;  %s91_s19 = sadd.s32 1, %s1454_s14 }
   0x5   : > { %s88_s20 = ssub.s32 %s1458_s15, %s1518_s18  ;;  %p101_p0 = scmp.ne.s32.totalorder %s1454_s14, %s1450_s13 }
   0x6   : > { %p89_p1 = scmp.eq.s32.totalorder %s88_s20, 0  ;;  %p102_p2 = scmp.eq.s32.totalorder %s1514_s16, 1 }
   0x7   : > { %p107_p3 = scmp.ne.s32.totalorder %s1450_s13, %s1446_s12  ;;  %p108_p4 = scmp.eq.s32.totalorder %s1227_s17, 1 }
   0x8   : > { %s1529_s21 = scalar_select %p89_p1, %s1454_s14, %s91_s19  }
   0x9   : > { %p1531_p5 = por %p102_p2, %p101_p0  ;;  %p1535_p6 = por %p108_p4, %p107_p3 }
   0xa   : > { %p1230_p7 = scmp.ge.s32.totalorder %s1458_s15, 1  ;;  %p140_p8 = scmp.lt.s32.totalorder %s1458_s15, 3 }
   0xc   : > { %p141_p9 = pnand %p1230_p7, %p140_p8 }
   0xd   : > { %p164_p10 = scmp.lt.s32.totalorder (!%p141_p9), %s1514_s16, 1  ;;  %s1464_s29 = smov (!%p141_p9), 127  }
   0xe   : > { %144 = sbr.rel (%p141_p9) target bundleno = 430 (0x1ae), region = 32  ;;  %s1465_s30 = smov (!%p141_p9), 126  }
   0xf   : > { %s1466_s4 = smov (!%p141_p9), 110   ;;  %s1467_s5 = smov (!%p141_p9), 109  }
  0x10   : > { %s1468_s6 = smov (!%p141_p9), 108   ;;  %s1469_s7 = smov (!%p141_p9), 92  }
  0x11   : > { %s1470_s8 = smov (!%p141_p9), 91   ;;  %s1471_s9 = smov (!%p141_p9), 90  }
  0x12   : > { %s161_s17 = sand.u32 (!%p141_p9), 1, %s1450_s13   ;;  %s1344_s20 = smul.u32 (!%p141_p9), 384, %s1514_s16 }
  0x13   : > { %v179_v0 = vlaneseq  ;;  %v1460_v1 = vmov 1983009808   ;;  %v1461_v3 = vmov 0.0   ;;  %s165_s24 = scalar_select %p164_p10, %s1514_s16, 1  ;;  %vm1462_vm0 = vmmov 0   ;;  %v1137_v13 = vld [vmem:[%s1700_s2] sm:$0xff] }
  0x14   : > { %v177_v2 = vunpack.c.l.s4 %v1460_v1  ;;  %1288 = vmatprep.subr.bf16.mxu1 %v1461_v3  ;;  %1290 = vmatprep.mubr.msk.bf16.mxu1 %vm1462_vm0, %v1461_v3  ;;  %v1463_v6 = vmov 0   ;;  %vm204_vm1 = vcmask 1041408   ;;  %vm197_vm2 = vcmask 1039360   ;;  %v1232_v18 = vld [vmem:[%s1699_s1 + $0x4] sm:$0xf]  ;;  %s1342_s19 = smul.u32 24, %s161_s17 }
  0x15   : > { %v180_v4 = vshrl.u32 %v179_v0, 7  ;;  %s1343_s25 = smul.u32 6, %s165_s24  ;;  %246 = vmatprep.mubr.bf16.mxu0 %v1463_v6  ;;  %1396 = vset.pattern.permute.xlu0 %v1463_v6  ;;  %vm200_vm3 = vcmask 31744   ;;  %vm396_vm4 = vcmask 1031168   ;;  %v171_v28 = vld [vmem:[%s1699_s1] sm:$0xf] }
  0x16   : > { %v178_v5 = vunpack.c.0.s8 %v177_v2  ;;  %vm503_vm5 = vcmask 900096   ;;  %v1239_v37 = vld [vmem:[%s1699_s1 + $0x8] sm:$0xf]  ;;  %vm610_vm6 = vcmask 891904   ;;  %v1243_v46 = vld [vmem:[%s1699_s1 + $0xc] sm:$0xf] }
  0x17   : > { %s168_s28 = scalar_lea.vmem %s1698_s0, %s1343_s25  ;;  %vm717_vm7 = vcmask 883712   ;;  %v1247_v54 = vld [vmem:[%s1699_s1 + $0x10] sm:$0xf]  ;;  %vm824_vm8 = vcmask 752640   ;;  %v1251_v62 = vld [vmem:[%s1699_s1 + $0x14] sm:$0xf] }
  0x18   : > { %v181_v7 = vsub.s32 %v178_v5, %v180_v4  ;;  %v170_v8 = vld [vmem:[%s168_s28] sm:$0x3f]  ;;  %vm931_vm9 = vcmask 744448   ;;  %vm1038_vm10 = vcmask 736256   ;;  %vm1151_vm11 = vcmask 261120   ;;  %s163_s24 = scalar_lea.vmem [#allocation2], %s1342_s19  ;;  %s1166_s28 = scalar_lea.hbm %s1701_s3, %s1344_s20 }
  0x19   : > { %v175_v10 = vcombine.high %v170_v8, %v170_v8  ;;  %s1168_s25 = sshll.u32 %s163_s24, 4  ;;  %s1472_s16 = smov [#allocation2]   ;;  %s1169_s25 = int_to_ptr.vmem [resolvable:$true] %s1168_s25 }
  0x1a   : > { %v182_v9 = vrot.slane %v170_v8, %v181_v7 }
  0x1b   : > { %v189_v11 = vrot.slane %v175_v10, %v181_v7  ;;  %v1255_v7 = vld [vmem:[%s1699_s1 + $0x18] sm:$0xf] }
  0x1c   : > { %191 = vrot.lane.b32.xlu0 %v182_v9, %s1464_s29  ;;  %v190_v12 = vcombine.high %v182_v9, %v182_v9  ;;  %v299_v24 = vsel %vm204_vm1, %v182_v9, 0 }
  0x1d   : > { %195 = vrot.lane.b32.xlu1 %v189_v11, %s1464_s29  ;;  %v305_v21 = vsel %vm204_vm1, %v189_v11, 0 }
  0x20   : > { %193 = vrot.lane.b32.xlu0 %v190_v12, %s1464_s29  ;;  %s1154_s29 = scalar_lea.sflag [#allocation3], %s161_s17 }
  0x21   : > { %390 = vrot.lane.b32.xlu1 %v182_v9, %s1465_s30 }
  0x24   : > { %392 = vrot.lane.b32.xlu0 %v190_v12, %s1465_s30 }
  0x25   : > { %394 = vrot.lane.b32.xlu1 %v189_v11, %s1465_s30  ;;  %s1398_s30 = scalar_lea.vmem %s1169_s25, 384 }
  0x26   : > { %p1399_p11 = scmp.ne.s32.totalorder %s1169_s25, %s1398_s30 }
  0x28   : > { %497 = vrot.lane.b32.xlu0 %v182_v9, %s1466_s4  ;;  %p1400_p12 = pnand %p1399_p11, %p1531_p5 }
  0x29   : > { %499 = vrot.lane.b32.xlu1 %v190_v12, %s1466_s4 }
  0x2a   : > { %p1401_p13 = pneg %p1400_p12 }
  0x2c   : > { %501 = vrot.lane.b32.xlu0 %v189_v11, %s1466_s4  ;;  %s1402_s4 = sshll.u32 %s1472_s16, 4  ;;  %s1403_s4 = int_to_ptr.vmem [resolvable:$false] %s1402_s4 }
  0x2d   : > { %604 = vrot.lane.b32.xlu1 %v182_v9, %s1467_s5  ;;  %p1405_p0 = scmp.lt.s32.totalorder %s1169_s25, %s1403_s4 }
  0x30   : > { %606 = vrot.lane.b32.xlu0 %v190_v12, %s1467_s5 }
  0x31   : > { %608 = vrot.lane.b32.xlu1 %v189_v11, %s1467_s5  ;;  %s1404_s5 = scalar_lea.vmem %s1403_s4, 768 }
  0x32   : > { %p1406_p1 = scmp.lt.s32.totalorder %s1404_s5, %s1398_s30 }
  0x34   : > { %711 = vrot.lane.b32.xlu0 %v182_v9, %s1468_s6  ;;  %p1407_p2 = por %p1406_p1, %p1405_p0 }
  0x35   : > { %713 = vrot.lane.b32.xlu1 %v190_v12, %s1468_s6 }
  0x36   : > { %p1408_p3 = pnand %p1407_p2, %p1401_p13 }
  0x38   : > { %715 = vrot.lane.b32.xlu0 %v189_v11, %s1468_s6 }
  0x39   : > { %818 = vrot.lane.b32.xlu1 %v182_v9, %s1469_s7 }
  0x3c   : > { %820 = vrot.lane.b32.xlu0 %v190_v12, %s1469_s7 }
  0x3d   : > { %822 = vrot.lane.b32.xlu1 %v189_v11, %s1469_s7 }
  0x40   : > { %925 = vrot.lane.b32.xlu0 %v182_v9, %s1470_s8 }
  0x41   : > { %927 = vrot.lane.b32.xlu1 %v190_v12, %s1470_s8 }
  0x44   : > { %929 = vrot.lane.b32.xlu0 %v189_v11, %s1470_s8 }
  0x45   : > { %1032 = vrot.lane.b32.xlu1 %v182_v9, %s1471_s9 }
  0x48   : > { %1034 = vrot.lane.b32.xlu0 %v190_v12, %s1471_s9 }
  0x49   : > { %1036 = vrot.lane.b32.xlu1 %v189_v11, %s1471_s9 }
  0x4c   : > { %1140 = vperm.xlu0 %1396, %v1137_v13  }
  0x8e   : > { %v192_v14 = vpop.permute.xlu0 %191 }
  0x8f   : > { %v196_v15 = vpop.permute.xlu1 %195 }
  0x90   : > { %v212_v16 = vsel %vm204_vm1, %v196_v15, 0 }
  0x91   : > { %1289 = vmatpush3.bf16.msra.mxu1 %v212_v16 }
  0x92   : > { %v194_v17 = vpop.permute.xlu0 %193  ;;  %1294 = vmatprep.subr.bf16.mxu1 %v1461_v3 }
  0x93   : > { %v199_v19 = vsel %vm197_vm2, %v194_v17, %v196_v15  ;;  %v198_v20 = vsel %vm197_vm2, %v192_v14, %v194_v17  ;;  %v391_v23 = vpop.permute.xlu1 %390  ;;  %v1259_v14 = vld [vmem:[%s1699_s1 + $0x1c] sm:$0xf] }
  0x94   : > { %1233 = vmatprep.subr.msk.bf16.mxu0 %vm204_vm1, %v199_v19  ;;  %v206_v22 = vsel %vm204_vm1, %v198_v20, 0  ;;  %1291 = vmatmul.mubr.msk.bf16.vlgmr.msra.gmra.mxu1 %vm200_vm3, %v1232_v18 }
  0x95   : > { %229 = vmatpush1.bf16.msra.mxu0 %v206_v22  ;;  %1295 = vmatpush3.bf16.msra.mxu1 %v305_v21 }
  0x96   : > { %1236 = vmatprep.subr.msk.bf16.mxu0 %vm204_vm1, %v190_v12  ;;  %v393_v25 = vpop.permute.xlu0 %392  ;;  %1296 = vmatprep.mubr.msk.bf16.mxu1 %vm1462_vm0, %v1461_v3 }
  0x97   : > { %1300 = vmatprep.subr.bf16.mxu1 %v1461_v3  ;;  %v395_v26 = vpop.permute.xlu1 %394  ;;  %v397_v30 = vsel %vm396_vm4, %v391_v23, %v393_v25 }
  0x98   : > { %1234 = vmatmul.mubr.msk.bf16.vlgmr.msra.gmra.mxu0 %vm200_vm3, %v1232_v18  ;;  %v398_v27 = vsel %vm396_vm4, %v393_v25, %v395_v26  ;;  %v409_v31 = vsel %vm204_vm1, %v395_v26, 0  ;;  %v403_v33 = vsel %vm204_vm1, %v397_v30, 0  ;;  %v1263_v18 = vld [vmem:[%s1699_s1 + $0x20] sm:$0xf] }
  0x99   : > { %322 = vmatpush1.bf16.msra.mxu0 %v299_v24  ;;  %339 = vmatprep.mubr.bf16.mxu0 %v1463_v6 }
  0x9a   : > { %1240 = vmatprep.subr.msk.bf16.mxu0 %vm204_vm1, %v398_v27  ;;  %v498_v29 = vpop.permute.xlu0 %497 }
  0x9b   : > { %v500_v32 = vpop.permute.xlu1 %499 }
  0x9c   : > { %1297 = vmatmul.mubr.msk.bf16.vlgmr.msra.gmra.mxu1 %vm200_vm3, %v171_v28  ;;  %v504_v39 = vsel %vm503_vm5, %v498_v29, %v500_v32 }
  0x9d   : > { %1301 = vmatpush3.bf16.msra.mxu1 %v409_v31  ;;  %1302 = vmatprep.mubr.msk.bf16.mxu1 %vm1462_vm0, %v1461_v3  ;;  %v510_v42 = vsel %vm204_vm1, %v504_v39, 0 }
  0x9e   : > { %v502_v34 = vpop.permute.xlu0 %501  ;;  %1306 = vmatprep.subr.bf16.mxu1 %v1461_v3 }
  0x9f   : > { %v505_v35 = vsel %vm503_vm5, %v500_v32, %v502_v34  ;;  %v605_v36 = vpop.permute.xlu1 %604  ;;  %v516_v40 = vsel %vm204_vm1, %v502_v34, 0 }
  0xa0   : > { %1237 = vmatmul.mubr.msk.bf16.vlgmr.msra.gmra.mxu0 %vm200_vm3, %v171_v28 }
  0xa1   : > { %426 = vmatpush1.bf16.msra.mxu0 %v403_v33  ;;  %443 = vmatprep.mubr.bf16.mxu0 %v1463_v6 }
  0xa2   : > { %1244 = vmatprep.subr.msk.bf16.mxu0 %vm204_vm1, %v505_v35  ;;  %v607_v38 = vpop.permute.xlu0 %606 }
  0xa3   : > { %v609_v41 = vpop.permute.xlu1 %608  ;;  %v611_v47 = vsel %vm610_vm6, %v605_v36, %v607_v38 }
  0xa4   : > { %1303 = vmatmul.mubr.msk.bf16.vlgmr.msra.gmra.mxu1 %vm200_vm3, %v1239_v37  ;;  %v612_v44 = vsel %vm610_vm6, %v607_v38, %v609_v41  ;;  %v623_v48 = vsel %vm204_vm1, %v609_v41, 0  ;;  %v617_v50 = vsel %vm204_vm1, %v611_v47, 0 }
  0xa5   : > { %1307 = vmatpush3.bf16.msra.mxu1 %v516_v40  ;;  %1308 = vmatprep.mubr.msk.bf16.mxu1 %vm1462_vm0, %v1461_v3 }
  0xa6   : > { %v712_v43 = vpop.permute.xlu0 %711  ;;  %1312 = vmatprep.subr.bf16.mxu1 %v1461_v3 }
  0xa7   : > { %v714_v45 = vpop.permute.xlu1 %713 }
  0xa8   : > { %1241 = vmatmul.mubr.msk.bf16.vlgmr.msra.gmra.mxu0 %vm200_vm3, %v1239_v37  ;;  %v718_v55 = vsel %vm717_vm7, %v712_v43, %v714_v45 }
  0xa9   : > { %533 = vmatpush1.bf16.msra.mxu0 %v510_v42  ;;  %550 = vmatprep.mubr.bf16.mxu0 %v1463_v6  ;;  %v724_v58 = vsel %vm204_vm1, %v718_v55, 0 }
  0xaa   : > { %1248 = vmatprep.subr.msk.bf16.mxu0 %vm204_vm1, %v612_v44  ;;  %v716_v49 = vpop.permute.xlu0 %715 }
  0xab   : > { %v819_v51 = vpop.permute.xlu1 %818  ;;  %v719_v52 = vsel %vm717_vm7, %v714_v45, %v716_v49  ;;  %v730_v56 = vsel %vm204_vm1, %v716_v49, 0 }
  0xac   : > { %1309 = vmatmul.mubr.msk.bf16.vlgmr.msra.gmra.mxu1 %vm200_vm3, %v1243_v46 }
  0xad   : > { %1313 = vmatpush3.bf16.msra.mxu1 %v623_v48  ;;  %1314 = vmatprep.mubr.msk.bf16.mxu1 %vm1462_vm0, %v1461_v3 }
  0xae   : > { %1318 = vmatprep.subr.bf16.mxu1 %v1461_v3  ;;  %v821_v53 = vpop.permute.xlu0 %820 }
  0xaf   : > { %v823_v57 = vpop.permute.xlu1 %822  ;;  %v825_v63 = vsel %vm824_vm8, %v819_v51, %v821_v53 }
  0xb0   : > { %1245 = vmatmul.mubr.msk.bf16.vlgmr.msra.gmra.mxu0 %vm200_vm3, %v1243_v46  ;;  %v826_v60 = vsel %vm824_vm8, %v821_v53, %v823_v57  ;;  %v837_v0 = vsel %vm204_vm1, %v823_v57, 0  ;;  %v831_v2 = vsel %vm204_vm1, %v825_v63, 0 }
  0xb1   : > { %640 = vmatpush1.bf16.msra.mxu0 %v617_v50  ;;  %657 = vmatprep.mubr.bf16.mxu0 %v1463_v6 }
  0xb2   : > { %1252 = vmatprep.subr.msk.bf16.mxu0 %vm204_vm1, %v719_v52  ;;  %v926_v59 = vpop.permute.xlu0 %925 }
  0xb3   : > { %v928_v61 = vpop.permute.xlu1 %927 }
  0xb4   : > { %1315 = vmatmul.mubr.msk.bf16.vlgmr.msra.gmra.mxu1 %vm200_vm3, %v1247_v54  ;;  %v932_v8 = vsel %vm931_vm9, %v926_v59, %v928_v61 }
  0xb5   : > { %1319 = vmatpush3.bf16.msra.mxu1 %v730_v56  ;;  %1320 = vmatprep.mubr.msk.bf16.mxu1 %vm1462_vm0, %v1461_v3  ;;  %v938_v12 = vsel %vm204_vm1, %v932_v8, 0 }
  0xb6   : > { %1324 = vmatprep.subr.bf16.mxu1 %v1461_v3  ;;  %v930_v1 = vpop.permute.xlu0 %929 }
  0xb7   : > { %v1033_v4 = vpop.permute.xlu1 %1032  ;;  %v933_v5 = vsel %vm931_vm9, %v928_v61, %v930_v1  ;;  %v944_v9 = vsel %vm204_vm1, %v930_v1, 0 }
  0xb8   : > { %1249 = vmatmul.mubr.msk.bf16.vlgmr.msra.gmra.mxu0 %vm200_vm3, %v1247_v54 }
  0xb9   : > { %747 = vmatpush1.bf16.msra.mxu0 %v724_v58  ;;  %764 = vmatprep.mubr.bf16.mxu0 %v1463_v6 }
  0xba   : > { %1256 = vmatprep.subr.msk.bf16.mxu0 %vm204_vm1, %v826_v60  ;;  %v1035_v10 = vpop.permute.xlu0 %1034 }
  0xbb   : > { %v1037_v11 = vpop.permute.xlu1 %1036  ;;  %v1039_v15 = vsel %vm1038_vm10, %v1033_v4, %v1035_v10 }
  0xbc   : > { %1321 = vmatmul.mubr.msk.bf16.vlgmr.msra.gmra.mxu1 %vm200_vm3, %v1251_v62  ;;  %v1040_v13 = vsel %vm1038_vm10, %v1035_v10, %v1037_v11  ;;  %v1051_v16 = vsel %vm204_vm1, %v1037_v11, 0  ;;  %v1045_v17 = vsel %vm204_vm1, %v1039_v15, 0 }
  0xbd   : > { %1325 = vmatpush3.bf16.msra.mxu1 %v837_v0  ;;  %1326 = vmatprep.mubr.msk.bf16.mxu1 %vm1462_vm0, %v1461_v3 }
  0xbe   : > { %1330 = vmatprep.subr.bf16.mxu1 %v1461_v3 }
  0xc0   : > { %1253 = vmatmul.mubr.msk.bf16.vlgmr.msra.gmra.mxu0 %vm200_vm3, %v1251_v62 }
  0xc1   : > { %854 = vmatpush1.bf16.msra.mxu0 %v831_v2  ;;  %871 = vmatprep.mubr.bf16.mxu0 %v1463_v6 }
  0xc2   : > { %1260 = vmatprep.subr.msk.bf16.mxu0 %vm204_vm1, %v933_v5 }
  0xc4   : > { %1327 = vmatmul.mubr.msk.bf16.vlgmr.msra.gmra.mxu1 %vm200_vm3, %v1255_v7 }
  0xc5   : > { %1331 = vmatpush3.bf16.msra.mxu1 %v944_v9  ;;  %1332 = vmatprep.mubr.msk.bf16.mxu1 %vm1462_vm0, %v1461_v3 }
  0xc6   : > { %1336 = vmatprep.subr.bf16.mxu1 %v1461_v3 }
  0xc8   : > { %1257 = vmatmul.mubr.msk.bf16.vlgmr.msra.gmra.mxu0 %vm200_vm3, %v1255_v7 }
  0xc9   : > { %961 = vmatpush1.bf16.msra.mxu0 %v938_v12  ;;  %978 = vmatprep.mubr.bf16.mxu0 %v1463_v6 }
  0xca   : > { %1264 = vmatprep.subr.msk.bf16.mxu0 %vm204_vm1, %v1040_v13 }
  0xcc   : > { %1333 = vmatmul.mubr.msk.bf16.vlgmr.msra.gmra.mxu1 %vm200_vm3, %v1259_v14 }
  0xcd   : > { %1337 = vmatpush3.bf16.msra.mxu1 %v1051_v16  ;;  %1338 = vmatprep.mubr.msk.bf16.mxu1 %vm1462_vm0, %v1461_v3 }
  0xd0   : > { %1261 = vmatmul.mubr.msk.bf16.vlgmr.msra.gmra.mxu0 %vm200_vm3, %v1259_v14 }
  0xd1   : > { %1068 = vmatpush1.bf16.msra.mxu0 %v1045_v17  ;;  %1085 = vmatprep.mubr.bf16.mxu0 %v1463_v6 }
  0xd4   : > { %1339 = vmatmul.mubr.msk.bf16.vlgmr.msra.gmra.mxu1 %vm200_vm3, %v1263_v18 }
  0xd8   : > { %1265 = vmatmul.mubr.msk.bf16.vlgmr.msra.gmra.mxu0 %vm200_vm3, %v1263_v18 }
 0x154   : > { %v289_v19 = vpop.f32.mrf.mxu1 }
 0x156   : > { %v1292_v20 = vpop.f32.mrf.mxu1 }
 0x158   : > { %v248_v21 = vpop.f32.mrf.mxu0  ;;  %v292_v22 = vpop.f32.mrf.mxu1 }
 0x15a   : > { %v250_v23 = vpop.f32.mrf.mxu0  ;;  %v1293_v24 = vpop.f32.mrf.mxu1 }
 0x15c   : > { %v252_v3 = vpop.f32.mrf.mxu0  ;;  %v382_v25 = vpop.f32.mrf.mxu1 }
 0x15d   : > { %v383_v4 = vadd.f32 %v382_v25, %v289_v19 }
 0x15e   : > { %v253_v26 = vpop.f32.mrf.mxu0  ;;  %v1298_v27 = vpop.f32.mrf.mxu1 }
 0x160   : > { %v341_v28 = vpop.f32.mrf.mxu0  ;;  %v385_v6 = vpop.f32.mrf.mxu1 }
 0x161   : > { %v342_v10 = vadd.f32 %v341_v28, %v248_v21 }
 0x162   : > { %v343_v29 = vpop.f32.mrf.mxu0  ;;  %v1299_v30 = vpop.f32.mrf.mxu1 }
 0x163   : > { %v344_v14 = vadd.f32 %v343_v29, %v250_v23 }
 0x164   : > { %v345_v31 = vpop.f32.mrf.mxu0  ;;  %v486_v32 = vpop.f32.mrf.mxu1 }
 0x165   : > { %v494_v8 = vadd.f32 %v486_v32, %v383_v4 }
 0x166   : > { %v346_v33 = vpop.f32.mrf.mxu0  ;;  %v1304_v34 = vpop.f32.mrf.mxu1 }
 0x168   : > { %v445_v35 = vpop.f32.mrf.mxu0  ;;  %v489_v36 = vpop.f32.mrf.mxu1 }
 0x169   : > { %v492_v15 = vadd.f32 %v445_v35, %v342_v10  ;;  %v1141_v35 = vpop.permute.xlu0 %1140 }
 0x16a   : > { %v447_v37 = vpop.f32.mrf.mxu0  ;;  %v1305_v38 = vpop.f32.mrf.mxu1 }
 0x16b   : > { %v493_v20 = vadd.f32 %v447_v37, %v344_v14 }
 0x16c   : > { %v449_v39 = vpop.f32.mrf.mxu0  ;;  %v593_v40 = vpop.f32.mrf.mxu1 }
 0x16d   : > { %v601_v12 = vadd.f32 %v593_v40, %v494_v8 }
 0x16e   : > { %v450_v41 = vpop.f32.mrf.mxu0  ;;  %v1310_v42 = vpop.f32.mrf.mxu1 }
 0x170   : > { %v552_v43 = vpop.f32.mrf.mxu0  ;;  %v596_v44 = vpop.f32.mrf.mxu1 }
 0x171   : > { %v599_v22 = vadd.f32 %v552_v43, %v492_v15 }
 0x172   : > { %v554_v45 = vpop.f32.mrf.mxu0  ;;  %v1311_v46 = vpop.f32.mrf.mxu1 }
 0x173   : > { %v600_v19 = vadd.f32 %v554_v45, %v493_v20 }
 0x174   : > { %v556_v47 = vpop.f32.mrf.mxu0  ;;  %v700_v48 = vpop.f32.mrf.mxu1 }
 0x175   : > { %v708_v17 = vadd.f32 %v700_v48, %v601_v12 }
 0x176   : > { %v557_v49 = vpop.f32.mrf.mxu0  ;;  %v1316_v50 = vpop.f32.mrf.mxu1 }
 0x178   : > { %v659_v51 = vpop.f32.mrf.mxu0  ;;  %v703_v52 = vpop.f32.mrf.mxu1 }
 0x179   : > { %v706_v25 = vadd.f32 %v659_v51, %v599_v22 }
 0x17a   : > { %v661_v53 = vpop.f32.mrf.mxu0  ;;  %v1317_v54 = vpop.f32.mrf.mxu1 }
 0x17b   : > { %v707_v28 = vadd.f32 %v661_v53, %v600_v19 }
 0x17c   : > { %v663_v55 = vpop.f32.mrf.mxu0  ;;  %v807_v56 = vpop.f32.mrf.mxu1 }
 0x17d   : > { %v815_v3 = vadd.f32 %v807_v56, %v708_v17 }
 0x17e   : > { %v664_v57 = vpop.f32.mrf.mxu0  ;;  %v1322_v58 = vpop.f32.mrf.mxu1 }
 0x180   : > { %v766_v59 = vpop.f32.mrf.mxu0  ;;  %v810_v60 = vpop.f32.mrf.mxu1 }
 0x181   : > { %v813_v30 = vadd.f32 %v766_v59, %v706_v25 }
 0x182   : > { %v768_v61 = vpop.f32.mrf.mxu0  ;;  %v1323_v62 = vpop.f32.mrf.mxu1 }
 0x183   : > { %v814_v32 = vadd.f32 %v768_v61, %v707_v28 }
 0x184   : > { %v770_v63 = vpop.f32.mrf.mxu0  ;;  %v914_v0 = vpop.f32.mrf.mxu1 }
 0x185   : > { %v922_v6 = vadd.f32 %v914_v0, %v815_v3 }
 0x186   : > { %v771_v1 = vpop.f32.mrf.mxu0  ;;  %v1328_v2 = vpop.f32.mrf.mxu1 }
 0x188   : > { %v873_v5 = vpop.f32.mrf.mxu0  ;;  %v917_v7 = vpop.f32.mrf.mxu1 }
 0x189   : > { %v920_v33 = vadd.f32 %v873_v5, %v813_v30 }
 0x18a   : > { %v875_v9 = vpop.f32.mrf.mxu0  ;;  %v1329_v11 = vpop.f32.mrf.mxu1 }
 0x18b   : > { %v921_v38 = vadd.f32 %v875_v9, %v814_v32 }
 0x18c   : > { %v877_v13 = vpop.f32.mrf.mxu0  ;;  %v1021_v16 = vpop.f32.mrf.mxu1 }
 0x18d   : > { %v1029_v23 = vadd.f32 %v1021_v16, %v922_v6 }
 0x18e   : > { %v878_v18 = vpop.f32.mrf.mxu0  ;;  %v1334_v24 = vpop.f32.mrf.mxu1 }
 0x190   : > { %v980_v26 = vpop.f32.mrf.mxu0  ;;  %v1024_v27 = vpop.f32.mrf.mxu1 }
 0x191   : > { %v1027_v39 = vadd.f32 %v980_v26, %v920_v33 }
 0x192   : > { %v982_v21 = vpop.f32.mrf.mxu0  ;;  %v1335_v31 = vpop.f32.mrf.mxu1 }
 0x193   : > { %v1028_v43 = vadd.f32 %v982_v21, %v921_v38 }
 0x194   : > { %v984_v29 = vpop.f32.mrf.mxu0  ;;  %v1128_v34 = vpop.f32.mrf.mxu1 }
 0x195   : > { %v1136_v36 = vadd.f32 %v1128_v34, %v1029_v23 }
 0x196   : > { %v985_v37 = vpop.f32.mrf.mxu0  ;;  %v1340_v40 = vpop.f32.mrf.mxu1 }
 0x197   : > { %v1145_v41 = vadd.f32 %v1141_v35, %v1136_v36 }
 0x198   : > { %v1087_v42 = vpop.f32.mrf.mxu0  ;;  %v1131_v45 = vpop.f32.mrf.mxu1 }
 0x199   : > { %v1134_v44 = vadd.f32 %v1087_v42, %v1027_v39  ;;  %v1148_v46 = vmax.f32 %v1145_v41, 0.0 }
 0x19a   : > { %v1089_v47 = vpop.f32.mrf.mxu0  ;;  %v1341_v50 = vpop.f32.mrf.mxu1 }
 0x19b   : > { %v1143_v48 = vadd.f32 %v1141_v35, %v1134_v44  ;;  %v1135_v49 = vadd.f32 %v1089_v47, %v1028_v43  ;;  %1152 = vst.msk [vmem:[%s163_s24 + $0x10] sm:$0xff] %vm1151_vm11, %v1148_v46 }
 0x19c   : > { %v1091_v51 = vpop.f32.mrf.mxu0 }
 0x19d   : > { %v1146_v52 = vmax.f32 %v1143_v48, 0.0  ;;  %v1144_v53 = vadd.f32 %v1141_v35, %v1135_v49 }
 0x19e   : > { %v1092_v54 = vpop.f32.mrf.mxu0 }
 0x19f   : > { %1149 = vst [vmem:[%s163_s24] sm:$0xff] %v1146_v52  ;;  %v1147_v55 = vmax.f32 %v1144_v53, 0.0 }
 0x1a1   : > { %1150 = vst [vmem:[%s163_s24 + $0x8] sm:$0xff] %v1147_v55 }
 0x1a2   : > { %1411 = shalt.err (!%p1408_p3)
}
 0x1a3   : > { %s1412_s6 = scalar_lea.hbm %s1166_s28, 384  ;;  %s1416_s9 = scalar_lea.hbm %s1701_s3, 768 }
 0x1a4   : > { %p1413_p4 = scmp.ne.s32.totalorder %s1166_s28, %s1412_s6  ;;  %p1417_p9 = scmp.lt.s32.totalorder %s1166_s28, %s1701_s3 }
 0x1a5   : > { %p1418_p10 = scmp.lt.s32.totalorder %s1416_s9, %s1412_s6 }
 0x1a6   : > { %p1414_p7 = pnand %p1413_p4, %p1531_p5 }
 0x1a7   : > { %p1419_p11 = por %p1418_p10, %p1417_p9 }
 0x1a8   : > { %p1415_p8 = pneg %p1414_p7 }
 0x1aa   : > { %p1420_p12 = pnand %p1419_p11, %p1415_p8 }
 0x1ac   : > { %1423 = shalt.err (!%p1420_p12)
}
 0x1ad   : > { %1345 = dma.vmem_to_hbm [thread:$0]  (%p1531_p5), %s1169_s25, 384, %s1166_s28, %s1154_s29  }
 0x1ae PF: > { %p1351_p13 = scmp.ge.s32.totalorder %s1458_s15, 2  ;;  %s1180_s17 = sand.u32 1, %s1446_s12  }
 0x1af   : > { %s1181_s19 = scalar_lea.sflag [#allocation3], %s1180_s17 }
 0x1b0   : > { %p1348_p0 = pnand %p1351_p13, %p1535_p6 }
 0x1b2   : > { %p1349_p1 = pneg %p1348_p0 }
 0x1b4   : > { %1441 = dma.done.wait (%p1349_p1), %s1181_s19, 384  }
 0x1b5   : > { %1443 = vsyncadd (%p1349_p1), %s1181_s19, 4294966912  ;;  %p13_p2 = scmp.ge.s32.totalorder %s1518_s18, 4   ;;  %s1704_s12 = smov %s1450_s13 }
 0x1b6   : > { %s1705_s13 = smov %s1454_s14  ;;  %s1706_s14 = smov %s1529_s21 }
 0x1b7   : > { %s1707_s15 = smov %s1518_s18  ;;  %15 = sbr.rel (!%p13_p2) target bundleno = 3 (0x3), region = 75 }
 0x1bc   :  { %1186 = vsyncpa [#allocation3], 1 }
 0x1bd   :  { %1188 = vsyncpa [#allocation3 + $0x1], 1 }

</bundles_post_ra>
